<compile_context>
chip_gen: v6e
topology: v6e:2x2x1
jax: 0.10.0
libtpu: 0.0.40
codegen_flags: <defaults>
</compile_context>

<pallas_src>
import jax
import jax.numpy as jnp
from jax import lax
from jax.experimental import pallas as pl
from jax.experimental.pallas import tpu as pltpu

_LANE = 128
_NCH = 22          # 6 r6d + 3 t_pr + 9 R_gt + 3 t_gt + 1 mask
_PI = 3.14159265358979


def _round_up(x, m):
    return ((x + m - 1) // m) * m


def _acos_poly(x):
    # Abramowitz & Stegun 4.4.45 style approximation (|err| <~ 6.8e-5 rad),
    # uses only mul/add/sqrt/abs/where -> VPU + EUP friendly.
    xa = jnp.abs(x)
    p = jnp.float32(-0.0187293)
    p = p * xa + jnp.float32(0.0742610)
    p = p * xa - jnp.float32(0.2121144)
    p = p * xa + jnp.float32(1.5707288)
    r = p * jnp.sqrt(jnp.maximum(1.0 - xa, 0.0))
    return jnp.where(x < 0, jnp.float32(_PI) - r, r)


def _speed_loss_kernel(x_ref, o_ref, acc_ref):
    # x_ref: (22, rows_tile, 128) packed features; each x_ref[c] is a dense
    # (rows_tile, 128) plane of one feature channel across anchors.
    @pl.when(pl.program_id(1) == 0)
    def _():
        acc_ref[...] = jnp.zeros_like(acc_ref)

    eps = jnp.float32(1e-20)

    a1x, a1y, a1z = x_ref[0], x_ref[1], x_ref[2]
    a2x, a2y, a2z = x_ref[3], x_ref[4], x_ref[5]

    # rot_6d_to_matrix: Gram-Schmidt rows b1, b2, b3 = b1 x b2.
    inv1 = lax.rsqrt(jnp.maximum(a1x * a1x + a1y * a1y + a1z * a1z, eps))
    b1x, b1y, b1z = a1x * inv1, a1y * inv1, a1z * inv1
    d = b1x * a2x + b1y * a2y + b1z * a2z
    u2x, u2y, u2z = a2x - d * b1x, a2y - d * b1y, a2z - d * b1z
    inv2 = lax.rsqrt(jnp.maximum(u2x * u2x + u2y * u2y + u2z * u2z, eps))
    b2x, b2y, b2z = u2x * inv2, u2y * inv2, u2z * inv2
    b3x = b1y * b2z - b1z * b2y
    b3y = b1z * b2x - b1x * b2z
    b3z = b1x * b2y - b1y * b2x

    # trace(R_pr @ R_gt^T) = sum_ij R_pr[i,j] * R_gt[i,j]; R_gt rows 9..17.
    trace = (b1x * x_ref[9] + b1y * x_ref[10] + b1z * x_ref[11]
             + b2x * x_ref[12] + b2y * x_ref[13] + b2z * x_ref[14]
             + b3x * x_ref[15] + b3y * x_ref[16] + b3z * x_ref[17])
    c = jnp.clip((trace - 1.0) * 0.5, -1.0 + 1e-6, 1.0 - 1e-6)
    rot_err = _acos_poly(c)

    tgx, tgy, tgz = x_ref[18], x_ref[19], x_ref[20]
    dx = x_ref[6] - tgx
    dy = x_ref[7] - tgy
    dz = x_ref[8] - tgz
    d2 = dx * dx + dy * dy + dz * dz
    g2 = tgx * tgx + tgy * tgy + tgz * tgz
    pos_err = jnp.sqrt(d2) * lax.rsqrt(jnp.maximum(g2, eps))

    m = x_ref[21]                              # {0,1}; 0 on padded anchors
    acc_ref[...] += m * (rot_err + pos_err)

    @pl.when(pl.program_id(1) == pl.num_programs(1) - 1)
    def _():
        # One sublane reduce per core; lane-dense (1,128) store.
        o_ref[...] = jnp.sum(acc_ref[...], axis=0, keepdims=True)


def speed_loss(r_raw_pr, t_pr, R_gt, t_gt, anchor_states, *,
               rows_tile=128, ncores=2):
    B, N = anchor_states.shape
    M = B * N
    f32 = jnp.float32

    r6d = r_raw_pr.reshape(M, 6).astype(f32)
    tpr = t_pr.reshape(M, 3).astype(f32)
    rgt = jnp.broadcast_to(R_gt.reshape(B, 1, 9), (B, N, 9)).reshape(M, 9).astype(f32)
    tgt = jnp.broadcast_to(t_gt.reshape(B, 1, 3), (B, N, 3)).reshape(M, 3).astype(f32)
    mask = (anchor_states.reshape(M, 1) == 1).astype(f32)

    feat = jnp.concatenate([r6d, tpr, rgt, tgt, mask], axis=1)   # (M, 22)

    # Tiling: anchors -> (ROWS, 128) planes; grid = (ncores, steps).
    rows_needed = _round_up(M, _LANE) // _LANE
    rt = min(rows_tile, rows_needed)
    rt = _round_up(max(rt, 1), 8)                 # sublane multiple of 8
    steps = _round_up(rows_needed, ncores * rt) // (ncores * rt)
    rows = ncores * steps * rt
    mp = rows * _LANE

    feat_p = jnp.pad(feat, ((0, mp - M), (0, 0)))                # (Mp, 22)
    packed = feat_p.T.reshape(_NCH, rows, _LANE)                 # (22, ROWS, 128)

    partials = pl.pallas_call(
        _speed_loss_kernel,
        out_shape=jax.ShapeDtypeStruct((1, ncores * _LANE), f32),
        grid_spec=pltpu.PrefetchScalarGridSpec(
            num_scalar_prefetch=0,
            grid=(ncores, steps),
            in_specs=[pl.BlockSpec((_NCH, rt, _LANE),
                                   lambda c, i: (0, c * steps + i, 0))],
            out_specs=pl.BlockSpec((1, _LANE), lambda c, i: (0, c)),
            scratch_shapes=[pltpu.VMEM((rt, _LANE), f32)]),
        compiler_params=pltpu.CompilerParams(
            dimension_semantics=("parallel", "arbitrary")),
    )(packed)

    cnt = jnp.sum(mask)              # number of positive anchors (wrapper side)
    return jnp.sum(partials) / cnt


# ---------------- pure-JAX reference (mirrors the PyTorch forward) ----------
def rot_6d_to_matrix_ref(d6):
    a1, a2 = d6[..., :3], d6[..., 3:]
    b1 = a1 / jnp.linalg.norm(a1, axis=-1, keepdims=True)
    b2 = a2 - jnp.sum(b1 * a2, axis=-1, keepdims=True) * b1
    b2 = b2 / jnp.linalg.norm(b2, axis=-1, keepdims=True)
    b3 = jnp.cross(b1, b2)
    return jnp.stack([b1, b2, b3], axis=-2)


def speed_loss_ref(r_raw_pr, t_pr, R_gt, t_gt, anchor_states):
    B, N = anchor_states.shape
    mask = (anchor_states == 1)
    R_pr = rot_6d_to_matrix_ref(r_raw_pr)                          # (B,N,3,3)
    Rg = jnp.broadcast_to(R_gt[:, None], (B, N, 3, 3))
    tg = jnp.broadcast_to(t_gt[:, None], (B, N, 3))
    tr = jnp.einsum('bnij,bnij->bn', R_pr, Rg)
    rot_err = jnp.arccos(jnp.clip((tr - 1.0) / 2.0, -1 + 1e-6, 1 - 1e-6))
    pos_err = (jnp.linalg.norm(t_pr - tg, axis=-1)
               / jnp.linalg.norm(tg, axis=-1))
    loss = rot_err + pos_err
    return jnp.sum(jnp.where(mask, loss, 0.0)) / jnp.sum(mask)


if __name__ == "__main__":
    key = jax.random.PRNGKey(0)
    B, N = 2, 8
    k1, k2, k3, k4, k5 = jax.random.split(key, 5)
    r_raw_pr = jax.random.normal(k1, (B, N, 6), jnp.float32)
    t_pr = jax.random.normal(k2, (B, N, 3), jnp.float32)
    R_gt = rot_6d_to_matrix_ref(jax.random.normal(k3, (B, 6), jnp.float32))
    t_gt = jax.random.normal(k4, (B, 3), jnp.float32) + 2.0
    anchor_states = jax.random.bernoulli(k5, 0.5, (B, N)).astype(jnp.float32)
    anchor_states = anchor_states.at[0, 0].set(1.0)  # ensure >=1 positive anchor

    loss = jax.jit(speed_loss)(r_raw_pr, t_pr, R_gt, t_gt, anchor_states)
    jax.block_until_ready(loss)

    ref = speed_loss_ref(r_raw_pr, t_pr, R_gt, t_gt, anchor_states)
    assert bool(jnp.isfinite(loss)), loss
    assert abs(float(loss) - float(ref)) < 1e-3, (float(loss), float(ref))
    print("KERNEL_OK")
</pallas_src>

<mosaic_0001>
module attributes {stable_mosaic.version = 11 : i64} {
  func.func @_speed_loss_kernel(%arg0: i32, %arg1: i32, %arg2: memref<22x8x128xf32, #tpu.memory_space<vmem>>, %arg3: memref<1x128xf32, #tpu.memory_space<vmem>>, %arg4: memref<8x128xf32, #tpu.memory_space<vmem>>) attributes {dimension_semantics = [#tpu.dimension_semantics<parallel>, #tpu.dimension_semantics<arbitrary>], iteration_bounds = array<i64: 2, 1>, scalar_prefetch = 0 : i64, scratch_operands = 1 : i64, tpu.core_type = #tpu.core_type<tc>, window_params = [{transform_indices = @transform_0, window_bounds = array<i64: 22, 8, 128>}, {transform_indices = @transform_1, window_bounds = array<i64: 1, 128>}]} {
    %c0_i32 = arith.constant 0 : i32
    %0 = arith.cmpi eq, %arg1, %c0_i32 : i32
    %1 = arith.extui %0 : i1 to i32
    %c0_i32_0 = arith.constant 0 : i32
    %2 = arith.cmpi ne, %1, %c0_i32_0 : i32
    scf.if %2 {
      %cst_65 = arith.constant 0.000000e+00 : f32
      %162 = vector.broadcast %cst_65 : f32 to vector<8x128xf32>
      %c0_66 = arith.constant 0 : index
      %c0_67 = arith.constant 0 : index
      %163 = vector.load %arg4[%c0_66, %c0_67] : memref<8x128xf32, #tpu.memory_space<vmem>>, vector<8x128xf32>
      tpu.vector_store %arg4[%c0_66, %c0_67], %162 {strides = array<i32>} : memref<8x128xf32, #tpu.memory_space<vmem>>, vector<8x128xf32>,
    } else {
    }
    %c0 = arith.constant 0 : index
    %c0_1 = arith.constant 0 : index
    %c0_2 = arith.constant 0 : index
    %3 = vector.load %arg2[%c0, %c0_1, %c0_2] : memref<22x8x128xf32, #tpu.memory_space<vmem>>, vector<1x8x128xf32>
    %4 = vector.shape_cast %3 : vector<1x8x128xf32> to vector<8x128xf32>
    %c1 = arith.constant 1 : index
    %c0_3 = arith.constant 0 : index
    %c0_4 = arith.constant 0 : index
    %5 = vector.load %arg2[%c1, %c0_3, %c0_4] : memref<22x8x128xf32, #tpu.memory_space<vmem>>, vector<1x8x128xf32>
    %6 = vector.shape_cast %5 : vector<1x8x128xf32> to vector<8x128xf32>
    %c2 = arith.constant 2 : index
    %c0_5 = arith.constant 0 : index
    %c0_6 = arith.constant 0 : index
    %7 = vector.load %arg2[%c2, %c0_5, %c0_6] : memref<22x8x128xf32, #tpu.memory_space<vmem>>, vector<1x8x128xf32>
    %8 = vector.shape_cast %7 : vector<1x8x128xf32> to vector<8x128xf32>
    %c3 = arith.constant 3 : index
    %c0_7 = arith.constant 0 : index
    %c0_8 = arith.constant 0 : index
    %9 = vector.load %arg2[%c3, %c0_7, %c0_8] : memref<22x8x128xf32, #tpu.memory_space<vmem>>, vector<1x8x128xf32>
    %10 = vector.shape_cast %9 : vector<1x8x128xf32> to vector<8x128xf32>
    %c4 = arith.constant 4 : index
    %c0_9 = arith.constant 0 : index
    %c0_10 = arith.constant 0 : index
    %11 = vector.load %arg2[%c4, %c0_9, %c0_10] : memref<22x8x128xf32, #tpu.memory_space<vmem>>, vector<1x8x128xf32>
    %12 = vector.shape_cast %11 : vector<1x8x128xf32> to vector<8x128xf32>
    %c5 = arith.constant 5 : index
    %c0_11 = arith.constant 0 : index
    %c0_12 = arith.constant 0 : index
    %13 = vector.load %arg2[%c5, %c0_11, %c0_12] : memref<22x8x128xf32, #tpu.memory_space<vmem>>, vector<1x8x128xf32>
    %14 = vector.shape_cast %13 : vector<1x8x128xf32> to vector<8x128xf32>
    %15 = arith.mulf %4, %4 : vector<8x128xf32>
    %16 = arith.mulf %6, %6 : vector<8x128xf32>
    %17 = arith.addf %15, %16 : vector<8x128xf32>
    %18 = arith.mulf %8, %8 : vector<8x128xf32>
    %19 = arith.addf %17, %18 : vector<8x128xf32>
    %cst = arith.constant 9.99999968E-21 : f32
    %20 = vector.broadcast %cst : f32 to vector<8x128xf32>
    %21 = arith.maximumf %19, %20 : vector<8x128xf32>
    %22 = math.rsqrt %21 : vector<8x128xf32>
    %23 = arith.mulf %4, %22 : vector<8x128xf32>
    %24 = arith.mulf %6, %22 : vector<8x128xf32>
    %25 = arith.mulf %8, %22 : vector<8x128xf32>
    %26 = arith.mulf %23, %10 : vector<8x128xf32>
    %27 = arith.mulf %24, %12 : vector<8x128xf32>
    %28 = arith.addf %26, %27 : vector<8x128xf32>
    %29 = arith.mulf %25, %14 : vector<8x128xf32>
    %30 = arith.addf %28, %29 : vector<8x128xf32>
    %31 = arith.mulf %30, %23 : vector<8x128xf32>
    %32 = arith.subf %10, %31 : vector<8x128xf32>
    %33 = arith.mulf %30, %24 : vector<8x128xf32>
    %34 = arith.subf %12, %33 : vector<8x128xf32>
    %35 = arith.mulf %30, %25 : vector<8x128xf32>
    %36 = arith.subf %14, %35 : vector<8x128xf32>
    %37 = arith.mulf %32, %32 : vector<8x128xf32>
    %38 = arith.mulf %34, %34 : vector<8x128xf32>
    %39 = arith.addf %37, %38 : vector<8x128xf32>
    %40 = arith.mulf %36, %36 : vector<8x128xf32>
    %41 = arith.addf %39, %40 : vector<8x128xf32>
    %cst_13 = arith.constant 9.99999968E-21 : f32
    %42 = vector.broadcast %cst_13 : f32 to vector<8x128xf32>
    %43 = arith.maximumf %41, %42 : vector<8x128xf32>
    %44 = math.rsqrt %43 : vector<8x128xf32>
    %45 = arith.mulf %32, %44 : vector<8x128xf32>
    %46 = arith.mulf %34, %44 : vector<8x128xf32>
    %47 = arith.mulf %36, %44 : vector<8x128xf32>
    %48 = arith.mulf %24, %47 : vector<8x128xf32>
    %49 = arith.mulf %25, %46 : vector<8x128xf32>
    %50 = arith.subf %48, %49 : vector<8x128xf32>
    %51 = arith.mulf %25, %45 : vector<8x128xf32>
    %52 = arith.mulf %23, %47 : vector<8x128xf32>
    %53 = arith.subf %51, %52 : vector<8x128xf32>
    %54 = arith.mulf %23, %46 : vector<8x128xf32>
    %55 = arith.mulf %24, %45 : vector<8x128xf32>
    %56 = arith.subf %54, %55 : vector<8x128xf32>
    %c9 = arith.constant 9 : index
    %c0_14 = arith.constant 0 : index
    %c0_15 = arith.constant 0 : index
    %57 = vector.load %arg2[%c9, %c0_14, %c0_15] : memref<22x8x128xf32, #tpu.memory_space<vmem>>, vector<1x8x128xf32>
    %58 = vector.shape_cast %57 : vector<1x8x128xf32> to vector<8x128xf32>
    %59 = arith.mulf %23, %58 : vector<8x128xf32>
    %c10 = arith.constant 10 : index
    %c0_16 = arith.constant 0 : index
    %c0_17 = arith.constant 0 : index
    %60 = vector.load %arg2[%c10, %c0_16, %c0_17] : memref<22x8x128xf32, #tpu.memory_space<vmem>>, vector<1x8x128xf32>
    %61 = vector.shape_cast %60 : vector<1x8x128xf32> to vector<8x128xf32>
    %62 = arith.mulf %24, %61 : vector<8x128xf32>
    %63 = arith.addf %59, %62 : vector<8x128xf32>
    %c11 = arith.constant 11 : index
    %c0_18 = arith.constant 0 : index
    %c0_19 = arith.constant 0 : index
    %64 = vector.load %arg2[%c11, %c0_18, %c0_19] : memref<22x8x128xf32, #tpu.memory_space<vmem>>, vector<1x8x128xf32>
    %65 = vector.shape_cast %64 : vector<1x8x128xf32> to vector<8x128xf32>
    %66 = arith.mulf %25, %65 : vector<8x128xf32>
    %67 = arith.addf %63, %66 : vector<8x128xf32>
    %c12 = arith.constant 12 : index
    %c0_20 = arith.constant 0 : index
    %c0_21 = arith.constant 0 : index
    %68 = vector.load %arg2[%c12, %c0_20, %c0_21] : memref<22x8x128xf32, #tpu.memory_space<vmem>>, vector<1x8x128xf32>
    %69 = vector.shape_cast %68 : vector<1x8x128xf32> to vector<8x128xf32>
    %70 = arith.mulf %45, %69 : vector<8x128xf32>
    %71 = arith.addf %67, %70 : vector<8x128xf32>
    %c13 = arith.constant 13 : index
    %c0_22 = arith.constant 0 : index
    %c0_23 = arith.constant 0 : index
    %72 = vector.load %arg2[%c13, %c0_22, %c0_23] : memref<22x8x128xf32, #tpu.memory_space<vmem>>, vector<1x8x128xf32>
    %73 = vector.shape_cast %72 : vector<1x8x128xf32> to vector<8x128xf32>
    %74 = arith.mulf %46, %73 : vector<8x128xf32>
    %75 = arith.addf %71, %74 : vector<8x128xf32>
    %c14 = arith.constant 14 : index
    %c0_24 = arith.constant 0 : index
    %c0_25 = arith.constant 0 : index
    %76 = vector.load %arg2[%c14, %c0_24, %c0_25] : memref<22x8x128xf32, #tpu.memory_space<vmem>>, vector<1x8x128xf32>
    %77 = vector.shape_cast %76 : vector<1x8x128xf32> to vector<8x128xf32>
    %78 = arith.mulf %47, %77 : vector<8x128xf32>
    %79 = arith.addf %75, %78 : vector<8x128xf32>
    %c15 = arith.constant 15 : index
    %c0_26 = arith.constant 0 : index
    %c0_27 = arith.constant 0 : index
    %80 = vector.load %arg2[%c15, %c0_26, %c0_27] : memref<22x8x128xf32, #tpu.memory_space<vmem>>, vector<1x8x128xf32>
    %81 = vector.shape_cast %80 : vector<1x8x128xf32> to vector<8x128xf32>
    %82 = arith.mulf %50, %81 : vector<8x128xf32>
    %83 = arith.addf %79, %82 : vector<8x128xf32>
    %c16 = arith.constant 16 : index
    %c0_28 = arith.constant 0 : index
    %c0_29 = arith.constant 0 : index
    %84 = vector.load %arg2[%c16, %c0_28, %c0_29] : memref<22x8x128xf32, #tpu.memory_space<vmem>>, vector<1x8x128xf32>
    %85 = vector.shape_cast %84 : vector<1x8x128xf32> to vector<8x128xf32>
    %86 = arith.mulf %53, %85 : vector<8x128xf32>
    %87 = arith.addf %83, %86 : vector<8x128xf32>
    %c17 = arith.constant 17 : index
    %c0_30 = arith.constant 0 : index
    %c0_31 = arith.constant 0 : index
    %88 = vector.load %arg2[%c17, %c0_30, %c0_31] : memref<22x8x128xf32, #tpu.memory_space<vmem>>, vector<1x8x128xf32>
    %89 = vector.shape_cast %88 : vector<1x8x128xf32> to vector<8x128xf32>
    %90 = arith.mulf %56, %89 : vector<8x128xf32>
    %91 = arith.addf %87, %90 : vector<8x128xf32>
    %cst_32 = arith.constant 1.000000e+00 : f32
    %92 = vector.broadcast %cst_32 : f32 to vector<8x128xf32>
    %93 = arith.subf %91, %92 : vector<8x128xf32>
    %cst_33 = arith.constant 5.000000e-01 : f32
    %94 = vector.broadcast %cst_33 : f32 to vector<8x128xf32>
    %95 = arith.mulf %93, %94 : vector<8x128xf32>
    %cst_34 = arith.constant -0.999998986 : f32
    %cst_35 = arith.constant 0.999998986 : f32
    %96 = vector.broadcast %cst_34 : f32 to vector<8x128xf32>
    %97 = arith.maximumf %96, %95 : vector<8x128xf32>
    %98 = vector.broadcast %cst_35 : f32 to vector<8x128xf32>
    %99 = arith.minimumf %98, %97 : vector<8x128xf32>
    %100 = math.absf %99 : vector<8x128xf32>
    %cst_36 = arith.constant -1.872930e-02 : f32
    %101 = vector.broadcast %cst_36 : f32 to vector<8x128xf32>
    %102 = arith.mulf %101, %100 : vector<8x128xf32>
    %cst_37 = arith.constant 7.426100e-02 : f32
    %103 = vector.broadcast %cst_37 : f32 to vector<8x128xf32>
    %104 = arith.addf %102, %103 : vector<8x128xf32>
    %105 = arith.mulf %104, %100 : vector<8x128xf32>
    %cst_38 = arith.constant 0.212114394 : f32
    %106 = vector.broadcast %cst_38 : f32 to vector<8x128xf32>
    %107 = arith.subf %105, %106 : vector<8x128xf32>
    %108 = arith.mulf %107, %100 : vector<8x128xf32>
    %cst_39 = arith.constant 1.57072878 : f32
    %109 = vector.broadcast %cst_39 : f32 to vector<8x128xf32>
    %110 = arith.addf %108, %109 : vector<8x128xf32>
    %cst_40 = arith.constant 1.000000e+00 : f32
    %111 = vector.broadcast %cst_40 : f32 to vector<8x128xf32>
    %112 = arith.subf %111, %100 : vector<8x128xf32>
    %cst_41 = arith.constant 0.000000e+00 : f32
    %113 = vector.broadcast %cst_41 : f32 to vector<8x128xf32>
    %114 = arith.maximumf %112, %113 : vector<8x128xf32>
    %115 = math.sqrt %114 : vector<8x128xf32>
    %116 = arith.mulf %110, %115 : vector<8x128xf32>
    %cst_42 = arith.constant 0.000000e+00 : f32
    %117 = vector.broadcast %cst_42 : f32 to vector<8x128xf32>
    %118 = arith.cmpf olt, %99, %117 : vector<8x128xf32>
    %cst_43 = arith.constant 3.14159274 : f32
    %119 = vector.broadcast %cst_43 : f32 to vector<8x128xf32>
    %120 = arith.subf %119, %116 : vector<8x128xf32>
    %121 = arith.select %118, %120, %116 : vector<8x128xi1>, vector<8x128xf32>
    %c18 = arith.constant 18 : index
    %c0_44 = arith.constant 0 : index
    %c0_45 = arith.constant 0 : index
    %122 = vector.load %arg2[%c18, %c0_44, %c0_45] : memref<22x8x128xf32, #tpu.memory_space<vmem>>, vector<1x8x128xf32>
    %123 = vector.shape_cast %122 : vector<1x8x128xf32> to vector<8x128xf32>
    %c19 = arith.constant 19 : index
    %c0_46 = arith.constant 0 : index
    %c0_47 = arith.constant 0 : index
    %124 = vector.load %arg2[%c19, %c0_46, %c0_47] : memref<22x8x128xf32, #tpu.memory_space<vmem>>, vector<1x8x128xf32>
    %125 = vector.shape_cast %124 : vector<1x8x128xf32> to vector<8x128xf32>
    %c20 = arith.constant 20 : index
    %c0_48 = arith.constant 0 : index
    %c0_49 = arith.constant 0 : index
    %126 = vector.load %arg2[%c20, %c0_48, %c0_49] : memref<22x8x128xf32, #tpu.memory_space<vmem>>, vector<1x8x128xf32>
    %127 = vector.shape_cast %126 : vector<1x8x128xf32> to vector<8x128xf32>
    %c6 = arith.constant 6 : index
    %c0_50 = arith.constant 0 : index
    %c0_51 = arith.constant 0 : index
    %128 = vector.load %arg2[%c6, %c0_50, %c0_51] : memref<22x8x128xf32, #tpu.memory_space<vmem>>, vector<1x8x128xf32>
    %129 = vector.shape_cast %128 : vector<1x8x128xf32> to vector<8x128xf32>
    %130 = arith.subf %129, %123 : vector<8x128xf32>
    %c7 = arith.constant 7 : index
    %c0_52 = arith.constant 0 : index
    %c0_53 = arith.constant 0 : index
    %131 = vector.load %arg2[%c7, %c0_52, %c0_53] : memref<22x8x128xf32, #tpu.memory_space<vmem>>, vector<1x8x128xf32>
    %132 = vector.shape_cast %131 : vector<1x8x128xf32> to vector<8x128xf32>
    %133 = arith.subf %132, %125 : vector<8x128xf32>
    %c8 = arith.constant 8 : index
    %c0_54 = arith.constant 0 : index
    %c0_55 = arith.constant 0 : index
    %134 = vector.load %arg2[%c8, %c0_54, %c0_55] : memref<22x8x128xf32, #tpu.memory_space<vmem>>, vector<1x8x128xf32>
    %135 = vector.shape_cast %134 : vector<1x8x128xf32> to vector<8x128xf32>
    %136 = arith.subf %135, %127 : vector<8x128xf32>
    %137 = arith.mulf %130, %130 : vector<8x128xf32>
    %138 = arith.mulf %133, %133 : vector<8x128xf32>
    %139 = arith.addf %137, %138 : vector<8x128xf32>
    %140 = arith.mulf %136, %136 : vector<8x128xf32>
    %141 = arith.addf %139, %140 : vector<8x128xf32>
    %142 = arith.mulf %123, %123 : vector<8x128xf32>
    %143 = arith.mulf %125, %125 : vector<8x128xf32>
    %144 = arith.addf %142, %143 : vector<8x128xf32>
    %145 = arith.mulf %127, %127 : vector<8x128xf32>
    %146 = arith.addf %144, %145 : vector<8x128xf32>
    %147 = math.sqrt %141 : vector<8x128xf32>
    %cst_56 = arith.constant 9.99999968E-21 : f32
    %148 = vector.broadcast %cst_56 : f32 to vector<8x128xf32>
    %149 = arith.maximumf %146, %148 : vector<8x128xf32>
    %150 = math.rsqrt %149 : vector<8x128xf32>
    %151 = arith.mulf %147, %150 : vector<8x128xf32>
    %c21 = arith.constant 21 : index
    %c0_57 = arith.constant 0 : index
    %c0_58 = arith.constant 0 : index
    %152 = vector.load %arg2[%c21, %c0_57, %c0_58] : memref<22x8x128xf32, #tpu.memory_space<vmem>>, vector<1x8x128xf32>
    %153 = vector.shape_cast %152 : vector<1x8x128xf32> to vector<8x128xf32>
    %c0_59 = arith.constant 0 : index
    %c0_60 = arith.constant 0 : index
    %154 = vector.load %arg4[%c0_59, %c0_60] : memref<8x128xf32, #tpu.memory_space<vmem>>, vector<8x128xf32>
    %155 = arith.addf %121, %151 : vector<8x128xf32>
    %156 = arith.mulf %153, %155 : vector<8x128xf32>
    %157 = arith.addf %154, %156 : vector<8x128xf32>
    %c0_61 = arith.constant 0 : index
    %c0_62 = arith.constant 0 : index
    %158 = vector.load %arg4[%c0_61, %c0_62] : memref<8x128xf32, #tpu.memory_space<vmem>>, vector<8x128xf32>
    tpu.vector_store %arg4[%c0_61, %c0_62], %157 {strides = array<i32>} : memref<8x128xf32, #tpu.memory_space<vmem>>, vector<8x128xf32>,
    %c0_i32_63 = arith.constant 0 : i32
    %159 = arith.cmpi eq, %arg1, %c0_i32_63 : i32
    %160 = arith.extui %159 : i1 to i32
    %c0_i32_64 = arith.constant 0 : i32
    %161 = arith.cmpi ne, %160, %c0_i32_64 : i32
    scf.if %161 {
      %c0_65 = arith.constant 0 : index
      %c0_66 = arith.constant 0 : index
      %162 = vector.load %arg4[%c0_65, %c0_66] : memref<8x128xf32, #tpu.memory_space<vmem>>, vector<8x128xf32>
      %cst_67 = arith.constant dense<0.000000e+00> : vector<128xf32>
      %163 = vector.multi_reduction <add>, %162, %cst_67 [0] : vector<8x128xf32> to vector<128xf32>
      %164 = vector.shape_cast %163 : vector<128xf32> to vector<1x128xf32>
      %c0_68 = arith.constant 0 : index
      %c0_69 = arith.constant 0 : index
      %165 = vector.load %arg3[%c0_68, %c0_69] : memref<1x128xf32, #tpu.memory_space<vmem>>, vector<1x128xf32>
      tpu.vector_store %arg3[%c0_68, %c0_69], %164 {strides = array<i32>} : memref<1x128xf32, #tpu.memory_space<vmem>>, vector<1x128xf32>,
    } else {
    }
    return
  }
  func.func @transform_0(%arg0: i32, %arg1: i32) -> (i32, i32, i32) {
    %c1_i32 = arith.constant 1 : i32
    %0 = arith.muli %arg0, %c1_i32 : i32
    %1 = arith.addi %0, %arg1 : i32
    %c0_i32 = arith.constant 0 : i32
    %c0_i32_0 = arith.constant 0 : i32
    %c0_i32_1 = arith.constant 0 : i32
    return %c0_i32, %1, %c0_i32_0 : i32, i32, i32
  }
  func.func @transform_1(%arg0: i32, %arg1: i32) -> (i32, i32) {
    %c0_i32 = arith.constant 0 : i32
    %c0_i32_0 = arith.constant 0 : i32
    return %c0_i32, %arg0 : i32, i32
  }
}

</mosaic_0001>

<bundles_post_ra>
// kernel: speed_loss.1
= control target key start
LH: loop header
LB: loop body
LE: loop exit
PB: predicated region body
PF: predicated region fallthrough
CT: control target
= control target key end

     0   :  { %s612_s6 = smov 0   ;;  %s614_s7 = smov 0   ;;  %s750_s0 = inlined_call_operand.vmem [shape: f32[22,16,128], index: 0, kind: input, shape index: {}]   ;;  %s751_s1 = inlined_call_operand.vmem [shape: f32[1,256], index: 1, kind: output, shape index: {}]  }
   0x1   :  { %s616_s8 = smov 0   ;;  %s618_s9 = smov 0  }
   0x2   :  { %s620_s10 = smov 0  }
   0x3 LB: > { %s23_s11 = sadd.s32 1, %s596_s9  ;;  %p39_p1 = scmp.ne.s32.totalorder %s588_s7, %s584_s6  ;;  %s600_s10 = sphi %s620_s10, %s11_s10   ;;  %s596_s9 = sphi %s618_s9, %s755_s9   ;;  %s592_s8 = sphi %s616_s8, %s754_s8   ;;  %s588_s7 = sphi %s614_s7, %s753_s7   ;;  %s584_s6 = sphi %s612_s6, %s752_s6  }
   0x4   : > { %p25_p0 = scmp.ge.s32.totalorder %s23_s11, 2  ;;  %p40_p2 = scmp.eq.s32.totalorder %s600_s10, 0 }
   0x5   : > { %s32_s13 = sadd.s32 1, %s588_s7  ;;  %p481_p5 = scmp.ge.s32.totalorder %s600_s10, 2 }
   0x6   : > { %s757_s11 = smov (%p25_p0, %s23_s11), 0  ;;  %p41_p3 = por %p40_p2, %p39_p1 }
   0x7   : > { %s29_s12 = ssub.s32 %s596_s9, %s757_s11  ;;  %91 = sbr.rel (%p481_p5) target bundleno = 27 (0x1b), region = 16 }
   0x8   : > { %p30_p4 = scmp.eq.s32.totalorder %s29_s12, 0 }
   0xa   : > { %s647_s14 = scalar_select %p30_p4, %s588_s7, %s32_s13  }
   0xc   : > { %94 = sbr.rel (!%p41_p3) target bundleno = 27 (0x1b), region = 20  ;;  %s96_s15 = sand.u32 (%p41_p3), 1, %s588_s7  }
   0xd   : > { %s482_s16 = sshll.u32 (%p41_p3), %s596_s9, 3  ;;  %s510_s17 = smul.u32 (%p41_p3), 176, %s96_s15 }
   0xe   : > { %s655_s20 = scalar_lea.vmem (%p41_p3), %s750_s0, %s482_s16 }
   0xf   : > { %v172_v0 = vld [vmem:[%s655_s20] sm:$0xff] (%p41_p3)  ;;  %v174_v1 = vld [vmem:[%s655_s20 + $0x10] sm:$0xff] (%p41_p3)  ;;  %s663_s21 = scalar_lea.vmem (%p41_p3), [#allocation3], %s510_s17 }
  0x10   : > { %v176_v2 = vld [vmem:[%s655_s20 + $0x20] sm:$0xff] (%p41_p3)  ;;  %v178_v3 = vld [vmem:[%s655_s20 + $0x30] sm:$0xff] (%p41_p3)  ;;  %173 = vst [vmem:[%s663_s21] sm:$0xff] (%p41_p3), %v172_v0  ;;  %175 = vst [vmem:[%s663_s21 + $0x8] sm:$0xff] (%p41_p3), %v174_v1 }
  0x11   : > { %v180_v4 = vld [vmem:[%s655_s20 + $0x40] sm:$0xff]  ;;  %v182_v5 = vld [vmem:[%s655_s20 + $0x50] sm:$0xff]  ;;  %177 = vst [vmem:[%s663_s21 + $0x10] sm:$0xff] %v176_v2  ;;  %179 = vst [vmem:[%s663_s21 + $0x18] sm:$0xff] %v178_v3 }
  0x12   : > { %181 = vst [vmem:[%s663_s21 + $0x20] sm:$0xff] %v180_v4  ;;  %183 = vst [vmem:[%s663_s21 + $0x28] sm:$0xff] %v182_v5  ;;  %v184_v6 = vld [vmem:[%s655_s20 + $0x60] sm:$0xff]  ;;  %v186_v7 = vld [vmem:[%s655_s20 + $0x70] sm:$0xff] }
  0x13   : > { %v188_v8 = vld [vmem:[%s655_s20 + $0x80] sm:$0xff]  ;;  %185 = vst [vmem:[%s663_s21 + $0x30] sm:$0xff] %v184_v6  ;;  %187 = vst [vmem:[%s663_s21 + $0x38] sm:$0xff] %v186_v7  ;;  %v190_v9 = vld [vmem:[%s655_s20 + $0x90] sm:$0xff] }
  0x14   : > { %189 = vst [vmem:[%s663_s21 + $0x40] sm:$0xff] %v188_v8  ;;  %v192_v10 = vld [vmem:[%s655_s20 + $0xa0] sm:$0xff]  ;;  %v194_v11 = vld [vmem:[%s655_s20 + $0xb0] sm:$0xff]  ;;  %191 = vst [vmem:[%s663_s21 + $0x48] sm:$0xff] %v190_v9 }
  0x15   : > { %193 = vst [vmem:[%s663_s21 + $0x50] sm:$0xff] %v192_v10  ;;  %195 = vst [vmem:[%s663_s21 + $0x58] sm:$0xff] %v194_v11  ;;  %v196_v12 = vld [vmem:[%s655_s20 + $0xc0] sm:$0xff]  ;;  %v198_v13 = vld [vmem:[%s655_s20 + $0xd0] sm:$0xff] }
  0x16   : > { %v200_v14 = vld [vmem:[%s655_s20 + $0xe0] sm:$0xff]  ;;  %197 = vst [vmem:[%s663_s21 + $0x60] sm:$0xff] %v196_v12  ;;  %199 = vst [vmem:[%s663_s21 + $0x68] sm:$0xff] %v198_v13  ;;  %v202_v15 = vld [vmem:[%s655_s20 + $0xf0] sm:$0xff] }
  0x17   : > { %201 = vst [vmem:[%s663_s21 + $0x70] sm:$0xff] %v200_v14  ;;  %v204_v16 = vld [vmem:[%s655_s20 + $0x100] sm:$0xff]  ;;  %v206_v17 = vld [vmem:[%s655_s20 + $0x110] sm:$0xff]  ;;  %203 = vst [vmem:[%s663_s21 + $0x78] sm:$0xff] %v202_v15 }
  0x18   : > { %205 = vst [vmem:[%s663_s21 + $0x80] sm:$0xff] %v204_v16  ;;  %207 = vst [vmem:[%s663_s21 + $0x88] sm:$0xff] %v206_v17  ;;  %v208_v18 = vld [vmem:[%s655_s20 + $0x120] sm:$0xff]  ;;  %v210_v19 = vld [vmem:[%s655_s20 + $0x130] sm:$0xff] }
  0x19   : > { %v212_v20 = vld [vmem:[%s655_s20 + $0x140] sm:$0xff]  ;;  %209 = vst [vmem:[%s663_s21 + $0x90] sm:$0xff] %v208_v18  ;;  %211 = vst [vmem:[%s663_s21 + $0x98] sm:$0xff] %v210_v19  ;;  %v214_v21 = vld [vmem:[%s655_s20 + $0x150] sm:$0xff] }
  0x1a   : > { %213 = vst [vmem:[%s663_s21 + $0xa0] sm:$0xff] %v212_v20  ;;  %215 = vst [vmem:[%s663_s21 + $0xa8] sm:$0xff] %v214_v21 }
  0x1b PF: > { %p483_p6 = scmp.ge.s32.totalorder %s600_s10, 1  ;;  %p220_p7 = scmp.lt.s32.totalorder %s600_s10, 3 }
  0x1d   : > { %p221_p8 = pnand %p483_p6, %p220_p7 }
  0x1e   : > { %s227_s22 = sand.u32 (!%p221_p8), 1, %s584_s6   ;;  %p245_p9 = scmp.lt.s32.totalorder (!%p221_p8), %s592_s8, 1 }
  0x1f   : > { %224 = sbr.rel (%p221_p8) target bundleno = 162 (0xa2), region = 58 }
  0x20   : > { %s511_s23 = smul.u32 (!%p221_p8), 176, %s227_s22 }
  0x22   : > { %s706_s24 = scalar_lea.vmem (!%p221_p8), [#allocation3], %s511_s23 }
  0x24   : > { %v253_v22 = vld [vmem:[%s706_s24] sm:$0xff]  ;;  %v484_v23 = vld [vmem:[%s706_s24 + $0x8] sm:$0xff]  ;;  %v485_v24 = vld [vmem:[%s706_s24 + $0x10] sm:$0xff]  ;;  %s759_s8 = smov (!%p245_p9, %s592_s8), 1 }
  0x25   : > { %v264_v25 = vmul.f32 %v253_v22, %v253_v22  ;;  %v265_v26 = vmul.f32 %v484_v23, %v484_v23  ;;  %v267_v27 = vmul.f32 %v485_v24, %v485_v24  ;;  %v486_v32 = vld [vmem:[%s706_s24 + $0x18] sm:$0xff]  ;;  %v487_v33 = vld [vmem:[%s706_s24 + $0x20] sm:$0xff]  ;;  %v488_v34 = vld [vmem:[%s706_s24 + $0x28] sm:$0xff]  ;;  %s247_s27 = scalar_lea.vmem %s751_s1, %s759_s8 }
  0x26   : > { %v489_v55 = vld [vmem:[%s706_s24 + $0x48] sm:$0xff]  ;;  %v490_v56 = vld [vmem:[%s706_s24 + $0x50] sm:$0xff]  ;;  %v491_v59 = vld [vmem:[%s706_s24 + $0x58] sm:$0xff] }
  0x27   : > { %v266_v28 = vadd.f32 %v265_v26, %v264_v25  ;;  %v492_v2 = vld [vmem:[%s706_s24 + $0x60] sm:$0xff]  ;;  %v493_v3 = vld [vmem:[%s706_s24 + $0x68] sm:$0xff]  ;;  %v494_v9 = vld [vmem:[%s706_s24 + $0x70] sm:$0xff] }
  0x28   : > { %v501_v10 = vld [vmem:[%s706_s24 + $0x90] sm:$0xff]  ;;  %v502_v15 = vld [vmem:[%s706_s24 + $0x98] sm:$0xff] }
  0x29   : > { %v268_v29 = vadd.f32 %v267_v27, %v266_v28  ;;  %v504_v16 = vld [vmem:[%s706_s24 + $0x30] sm:$0xff]  ;;  %v505_v17 = vld [vmem:[%s706_s24 + $0x38] sm:$0xff] }
  0x2a   : > { %v495_v19 = vld [vmem:[%s706_s24 + $0x78] sm:$0xff]  ;;  %v374_v25 = vsub.f32 %v505_v17, %v502_v15 }
  0x2b   : > { %v269_v30 = vmax.f32 %v268_v29, 1e-20  ;;  %v503_v29 = vld [vmem:[%s706_s24 + $0xa0] sm:$0xff] }
  0x2d   : > { %552 = vrsqrt.f32 %v269_v30  ;;  %v506_v30 = vld [vmem:[%s706_s24 + $0x40] sm:$0xff] }
  0x3a   : > { %v553_v31 = vpop.eup %552 }
  0x3b   : > { %v271_v35 = vmul.f32 %v553_v31, %v253_v22  ;;  %v272_v36 = vmul.f32 %v553_v31, %v484_v23  ;;  %v273_v37 = vmul.f32 %v553_v31, %v485_v24  ;;  %v496_v23 = vld [vmem:[%s706_s24 + $0x80] sm:$0xff]  ;;  %v371_v24 = vsub.f32 %v504_v16, %v501_v10  ;;  %v497_v31 = vld [vmem:[%s706_s24 + $0x88] sm:$0xff] }
  0x3d   : > { %v274_v38 = vmul.f32 %v486_v32, %v271_v35  ;;  %v275_v39 = vmul.f32 %v487_v33, %v272_v36  ;;  %v277_v40 = vmul.f32 %v488_v34, %v273_v37  ;;  %v306_v57 = vmul.f32 %v489_v55, %v271_v35 }
  0x3e   : > { %v309_v58 = vmul.f32 %v490_v56, %v272_v36  ;;  %v313_v61 = vmul.f32 %v491_v59, %v273_v37 }
  0x3f   : > { %v276_v41 = vadd.f32 %v275_v39, %v274_v38 }
  0x40   : > { %v310_v60 = vadd.f32 %v309_v58, %v306_v57 }
  0x41   : > { %v278_v42 = vadd.f32 %v277_v40, %v276_v41 }
  0x42   : > { %v314_v4 = vadd.f32 %v313_v61, %v310_v60 }
  0x43   : > { %v279_v43 = vmul.f32 %v278_v42, %v271_v35  ;;  %v281_v44 = vmul.f32 %v278_v42, %v272_v36  ;;  %v283_v45 = vmul.f32 %v278_v42, %v273_v37 }
  0x45   : > { %v280_v46 = vsub.f32 %v486_v32, %v279_v43  ;;  %v282_v47 = vsub.f32 %v487_v33, %v281_v44  ;;  %v284_v48 = vsub.f32 %v488_v34, %v283_v45  ;;  %v377_v34 = vsub.f32 %v506_v30, %v503_v29 }
  0x46   : > { %v383_v43 = vmul.f32 %v501_v10, %v501_v10  ;;  %v384_v44 = vmul.f32 %v502_v15, %v502_v15 }
  0x47   : > { %v285_v49 = vmul.f32 %v280_v46, %v280_v46  ;;  %v286_v50 = vmul.f32 %v282_v47, %v282_v47  ;;  %v288_v51 = vmul.f32 %v284_v48, %v284_v48  ;;  %v381_v41 = vmul.f32 %v377_v34, %v377_v34 }
  0x49   : > { %v287_v52 = vadd.f32 %v286_v50, %v285_v49  ;;  %v386_v49 = vmul.f32 %v503_v29, %v503_v29 }
  0x4b   : > { %v289_v53 = vadd.f32 %v288_v51, %v287_v52 }
  0x4d   : > { %v290_v54 = vmax.f32 %v289_v53, 1e-20 }
  0x4f   : > { %554 = vrsqrt.f32 %v290_v54 }
  0x5c   : > { %v555_v62 = vpop.eup %554 }
  0x5d   : > { %v292_v63 = vmul.f32 %v555_v62, %v280_v46  ;;  %v293_v0 = vmul.f32 %v555_v62, %v282_v47  ;;  %v294_v1 = vmul.f32 %v555_v62, %v284_v48  ;;  %v385_v48 = vadd.f32 %v384_v44, %v383_v43 }
  0x5f   : > { %v295_v5 = vmul.f32 %v294_v1, %v272_v36  ;;  %v296_v6 = vmul.f32 %v293_v0, %v273_v37  ;;  %v298_v7 = vmul.f32 %v292_v63, %v273_v37  ;;  %v299_v8 = vmul.f32 %v294_v1, %v271_v35 }
  0x60   : > { %v301_v11 = vmul.f32 %v293_v0, %v271_v35  ;;  %v302_v12 = vmul.f32 %v292_v63, %v272_v36  ;;  %v317_v13 = vmul.f32 %v492_v2, %v292_v63  ;;  %v321_v14 = vmul.f32 %v493_v3, %v293_v0 }
  0x61   : > { %v297_v18 = vsub.f32 %v295_v5, %v296_v6  ;;  %v300_v20 = vsub.f32 %v298_v7, %v299_v8  ;;  %v325_v22 = vmul.f32 %v494_v9, %v294_v1  ;;  %v378_v35 = vmul.f32 %v371_v24, %v371_v24 }
  0x62   : > { %v318_v21 = vadd.f32 %v317_v13, %v314_v4  ;;  %v303_v26 = vsub.f32 %v301_v11, %v302_v12  ;;  %v379_v36 = vmul.f32 %v374_v25, %v374_v25  ;;  %v387_v52 = vadd.f32 %v386_v49, %v385_v48  ;;  %v507_v13 = vld [vmem:[%s706_s24 + $0xa8] sm:$0xff] }
  0x63   : > { %v329_v28 = vmul.f32 %v495_v19, %v297_v18  ;;  %v333_v33 = vmul.f32 %v496_v23, %v300_v20 }
  0x64   : > { %v322_v27 = vadd.f32 %v321_v14, %v318_v21  ;;  %v337_v38 = vmul.f32 %v497_v31, %v303_v26  ;;  %v380_v40 = vadd.f32 %v379_v36, %v378_v35  ;;  %v395_v57 = vmax.f32 %v387_v52, 1e-20 }
  0x66   : > { %v326_v32 = vadd.f32 %v325_v22, %v322_v27  ;;  %v382_v46 = vadd.f32 %v381_v41, %v380_v40 }
  0x68   : > { %v330_v37 = vadd.f32 %v329_v28, %v326_v32  ;;  %556 = vrsqrt.f32 %v382_v46  ;;  %vm390_vm0 = vcmp.eq.f32.partialorder %v382_v46, inf  ;;  %v393_v63 = vand.u32 2147483648, %v382_v46 }
  0x69   : > { %vm392_vm2 = vcmp.eq.f32.partialorder %v382_v46, 0.0 }
  0x6a   : > { %v334_v39 = vadd.f32 %v333_v33, %v330_v37 }
  0x6c   : > { %v338_v42 = vadd.f32 %v337_v38, %v334_v39 }
  0x6e   : > { %v498_v45 = vadd.f32 -1.0, %v338_v42 }
  0x70   : > { %v340_v47 = vmul.f32 0.5, %v498_v45 }
  0x72   : > { %v499_v50 = vclamps-f32 %v340_v47, 0.999999 }
  0x74   : > { %v343_v51 = vand.u32 2147483647, %v499_v50  ;;  %vm360_vm4 = vcmp.lt.f32.partialorder %v499_v50, 0.0 }
  0x75   : > { %v557_v59 = vpop.eup %556 }
  0x76   : > { %v344_v53 = vmul.f32 -0.0187293, %v343_v51  ;;  %v350_v54 = vsub.f32 1.0, %v343_v51  ;;  %v389_v61 = vmul.f32 %v557_v59, %v382_v46 }
  0x78   : > { %v345_v55 = vadd.f32 0.074261, %v344_v53  ;;  %v351_v56 = vmax.f32 %v350_v54, 0.0  ;;  %v391_v2 = vsel %vm390_vm0, %v382_v46, %v389_v61 }
  0x79   : > { %v394_v7 = vsel %vm392_vm2, %v393_v63, %v391_v2 }
  0x7a   : > { %558 = vrsqrt.f32 %v351_v56  ;;  %v346_v58 = vmul.f32 %v345_v55, %v343_v51  ;;  %vm354_vm1 = vcmp.eq.f32.partialorder %v351_v56, inf  ;;  %v357_v1 = vand.u32 2147483648, %v351_v56 }
  0x7b   : > { %560 = vrsqrt.f32 %v395_v57  ;;  %vm356_vm3 = vcmp.eq.f32.partialorder %v351_v56, 0.0 }
  0x7c   : > { %v500_v60 = vadd.f32 -0.2121144, %v346_v58 }
  0x7e   : > { %v348_v62 = vmul.f32 %v500_v60, %v343_v51 }
  0x80   : > { %v349_v3 = vadd.f32 1.5707288, %v348_v62 }
  0x87   : > { %v559_v0 = vpop.eup %558 }
  0x88   : > { %v353_v4 = vmul.f32 %v559_v0, %v351_v56  ;;  %v561_v5 = vpop.eup %560 }
  0x89   : > { %v397_v10 = vmul.f32 %v561_v5, %v394_v7 }
  0x8a   : > { %v355_v6 = vsel %vm354_vm1, %v351_v56, %v353_v4 }
  0x8b   : > { %v358_v8 = vsel %vm356_vm3, %v357_v1, %v355_v6 }
  0x8c   : > { %v359_v9 = vmul.f32 %v358_v8, %v349_v3 }
  0x8e   : > { %v361_v11 = vsub.f32 3.1415927, %v359_v9 }
  0x90   : > { %v362_v12 = vsel %vm360_vm4, %v361_v11, %v359_v9 }
  0x91   : > { %v401_v14 = vadd.f32 %v397_v10, %v362_v12 }
  0x93   : > { %v402_v15 = vmul.f32 %v507_v13, %v401_v14 }
  0x95   : > { %v409_v16 = vrot.slane %v402_v15, 4 }
  0x97   : > { %v410_v17 = vadd.f32 %v409_v16, %v402_v15 }
  0x99   : > { %v411_v18 = vrot.slane %v410_v17, 2 }
  0x9b   : > { %v412_v19 = vadd.f32 %v411_v18, %v410_v17 }
  0x9d   : > { %v413_v20 = vrot.slane %v412_v19, 1 }
  0x9f   : > { %v414_v21 = vadd.f32 %v413_v20, %v412_v19 }
  0xa1   : > { %415 = vst [vmem:[%s247_s27] sm:$0x1] %v414_v21 }
  0xa2 PF: > { %s11_s10 = sadd.s32 1, %s600_s10   ;;  %s752_s6 = smov %s588_s7 }
  0xa3   : > { %p8_p10 = scmp.ge.s32.totalorder %s11_s10, 4   ;;  %s753_s7 = smov %s647_s14 }
  0xa4   : > { %s754_s8 = smov %s596_s9  ;;  %s755_s9 = smov %s757_s11 }
  0xa5   :  { %10 = sbr.rel (!%p8_p10) target bundleno = 3 (0x3), region = 126 }

</bundles_post_ra>
